<compile_context>
chip_gen: v5e
topology: v5e:2x2
jax: 0.10.0
libtpu: 0.0.40
codegen_flags: <defaults>
</compile_context>

<pallas_src>
import functools

import jax
import jax.numpy as jnp
from jax import lax
from jax.experimental import pallas as pl
from jax.experimental.pallas import tpu as pltpu


def _round_up(x, m):
    return ((x + m - 1) // m) * m


def _ls_ce_kernel(n_rows, ignore_index, logits_ref, tgt_ref, part_ref):
    """Writes per-block partials [sum(-sum_c logp), sum(nll), n_valid] to lanes 0..2."""
    i = pl.program_id(0)
    tn, c = logits_ref.shape

    # numerically-stable pieces of log_softmax over classes (lane axis);
    # the full logp tile is never materialized.
    x = logits_ref[...].astype(jnp.float32)                        # (TN, C)
    m = jnp.max(x, axis=-1, keepdims=True)                         # (TN, 1)
    z = x - m
    lse = jnp.log(jnp.sum(jnp.exp(z), axis=-1, keepdims=True))     # (TN, 1)
    sum_z = jnp.sum(z, axis=-1, keepdims=True)                     # (TN, 1)

    # mask rows past the true N (ragged last block: contents unspecified)
    row_ids = i * tn + lax.broadcasted_iota(jnp.int32, (tn, 1), 0)
    row_valid = row_ids < n_rows                                   # (TN, 1)

    # smoothing term: -sum_c log p = C*lse - sum_c z   (all real rows)
    smooth_per_row = jnp.where(row_valid, c * lse - sum_z, 0.0)

    # NLL term: -log p[target] = lse - z[target] for non-ignored real rows.
    # (targets are assumed in [0, C) or == ignore_index, as torch requires)
    tgt = tgt_ref[...]                                             # (TN, 1) int32
    valid = (tgt != ignore_index) & row_valid                      # (TN, 1)
    col = lax.broadcasted_iota(jnp.int32, (tn, c), 1)              # (TN, C)
    picked_z = jnp.sum(jnp.where((col == tgt) & valid, z, 0.0),
                       axis=-1, keepdims=True)                     # (TN, 1)
    nll_per_row = jnp.where(valid, lse, 0.0) - picked_z            # (TN, 1)

    s_smooth = jnp.sum(smooth_per_row)
    s_nll = jnp.sum(nll_per_row)
    s_cnt = jnp.sum(valid.astype(jnp.float32))

    # pack the three partial scalars into lanes 0..2 of row 0 of a lane-dense
    # (8,128) tile; one tile per grid step -> grid axis is fully parallel.
    sub = lax.broadcasted_iota(jnp.int32, (8, 128), 0)
    lane = lax.broadcasted_iota(jnp.int32, (8, 128), 1)
    row0 = sub == 0
    part_ref[...] = (jnp.where(row0 & (lane == 0), s_smooth, 0.0)
                     + jnp.where(row0 & (lane == 1), s_nll, 0.0)
                     + jnp.where(row0 & (lane == 2), s_cnt, 0.0))


def label_smoothing_cross_entropy(logits, target, *, eps=0.1, reduction="mean",
                                  ignore_index=-100, block_rows=None,
                                  block_bytes_target=2 * 1024 * 1024):
    """Pallas implementation of LabelSmoothingCrossEntropy.forward.

    logits: [N, C] float, target: [N] int.  Supports reduction in {'mean','sum'}.
    """
    # TODO(synk): reduction='none' (per-row vector output) not implemented here.
    assert reduction in ("mean", "sum")
    n, c = logits.shape
    itemsize = jnp.dtype(logits.dtype).itemsize
    # dtype-aware sublane alignment: (8,128) f32, (16,128) bf16, (32,128) int8/fp8
    align = max(8, 32 // itemsize)

    if block_rows is None:
        tn = (block_bytes_target // max(1, c * itemsize)) // align * align
        tn = max(align, min(1024, tn))
    else:
        tn = _round_up(max(1, block_rows), align)
    tn = min(tn, _round_up(n, align))

    num_blocks = -(-n // tn)
    n_pad = num_blocks * tn

    # Only the (tiny) target vector is padded; logits are left unpadded and the
    # ragged last logits block is masked in-kernel via row_valid.
    tgt = target.astype(jnp.int32)
    if n_pad != n:
        tgt = jnp.pad(tgt, (0, n_pad - n), constant_values=ignore_index)
    tgt2d = tgt.reshape(n_pad, 1)

    kernel = functools.partial(_ls_ce_kernel, n, ignore_index)

    logits_block_bytes = tn * c * itemsize
    tgt_block_bytes = tn * 128 * 4            # (tn,1) int32 is lane-padded in VMEM
    vmem_limit = int(min(64 << 20,
                         max(16 << 20,
                             4 * logits_block_bytes + 4 * tgt_block_bytes + (4 << 20))))

    cost = pl.CostEstimate(
        flops=int(6 * n * c),
        transcendentals=int(n * c),
        bytes_accessed=int(n * c * itemsize + n_pad * 4 + num_blocks * 8 * 128 * 4))

    partials = pl.pallas_call(
        kernel,
        out_shape=jax.ShapeDtypeStruct((num_blocks * 8, 128), jnp.float32),
        grid=(num_blocks,),
        in_specs=[
            pl.BlockSpec((tn, c), lambda i: (i, 0)),
            pl.BlockSpec((tn, 1), lambda i: (i, 0)),
        ],
        out_specs=pl.BlockSpec((8, 128), lambda i: (i, 0)),
        compiler_params=pltpu.CompilerParams(
            dimension_semantics=("parallel",),
            vmem_limit_bytes=vmem_limit),
        cost_estimate=cost,
    )(logits, tgt2d)

    sums = jnp.sum(partials, axis=0)          # (128,) f32 cross-block reduction
    sum_neg_logp, sum_nll, n_valid = sums[0], sums[1], sums[2]

    if reduction == "mean":
        smooth_loss = sum_neg_logp / n        # mean over ALL rows (torch semantics)
        nll_loss = sum_nll / n_valid          # mean over non-ignored rows (NaN if none)
    else:  # 'sum'
        smooth_loss = sum_neg_logp
        nll_loss = sum_nll
    return smooth_loss * eps / c + (1.0 - eps) * nll_loss


def _reference(logits, target, eps=0.1, reduction="mean", ignore_index=-100):
    """Pure-JAX reference mirroring the PyTorch forward."""
    c = logits.shape[-1]
    logp = jax.nn.log_softmax(logits.astype(jnp.float32), axis=-1)
    valid = target != ignore_index
    picked = -jnp.take_along_axis(
        logp, jnp.clip(target, 0, c - 1)[:, None].astype(jnp.int32), axis=-1)[:, 0]
    if reduction == "mean":
        smooth = jnp.mean(-jnp.sum(logp, axis=-1))
        nll = jnp.sum(jnp.where(valid, picked, 0.0)) / jnp.sum(valid)
    else:
        smooth = -jnp.sum(logp)
        nll = jnp.sum(jnp.where(valid, picked, 0.0))
    return smooth * eps / c + (1.0 - eps) * nll


if __name__ == "__main__":
    key = jax.random.PRNGKey(0)
    k1, k2, k3, k4 = jax.random.split(key, 4)

    # case 1: tiny shape, one ignored row, mean reduction
    N, C = 8, 32
    logits = jax.random.normal(k1, (N, C), dtype=jnp.float32)
    target = jax.random.randint(k2, (N,), 0, C, dtype=jnp.int32).at[3].set(-100)
    out = jax.block_until_ready(
        label_smoothing_cross_entropy(logits, target, eps=0.1, reduction="mean"))
    ref = jax.block_until_ready(_reference(logits, target, reduction="mean"))
    assert jnp.allclose(out, ref, rtol=1e-5, atol=1e-5), (out, ref)

    # case 2: ragged N (not a multiple of the row block), multiple blocks,
    #         both reductions (exercises the no-pad ragged-last-block path)
    N2, C2 = 37, 32
    logits2 = jax.random.normal(k3, (N2, C2), dtype=jnp.float32)
    target2 = jax.random.randint(k4, (N2,), 0, C2, dtype=jnp.int32)
    target2 = target2.at[0].set(-100).at[20].set(-100)
    for red in ("mean", "sum"):
        out2 = jax.block_until_ready(
            label_smoothing_cross_entropy(logits2, target2, eps=0.1,
                                          reduction=red, block_rows=16))
        ref2 = jax.block_until_ready(_reference(logits2, target2, reduction=red))
        assert jnp.allclose(out2, ref2, rtol=1e-5, atol=1e-5), (red, out2, ref2)

    # case 3: bf16 logits (exercises dtype-aware 16-row sublane alignment and
    #         in-kernel upcast; HBM traffic stays bf16)
    logits3 = jax.random.normal(k1, (24, 32), dtype=jnp.float32).astype(jnp.bfloat16)
    target3 = jax.random.randint(k2, (24,), 0, 32, dtype=jnp.int32)
    out3 = jax.block_until_ready(
        label_smoothing_cross_entropy(logits3, target3, eps=0.1, reduction="mean"))
    ref3 = jax.block_until_ready(_reference(logits3, target3, reduction="mean"))
    assert jnp.allclose(out3, ref3, rtol=1e-4, atol=1e-4), (out3, ref3)

    print("KERNEL_OK")
</pallas_src>

<mosaic_0001>
module attributes {stable_mosaic.version = 11 : i64} {
  func.func @_ls_ce_kernel(%arg0: i32, %arg1: memref<8x32xf32, #tpu.memory_space<vmem>>, %arg2: memref<8x1xi32, #tpu.memory_space<vmem>>, %arg3: memref<8x128xf32, #tpu.memory_space<vmem>>) attributes {dimension_semantics = [#tpu.dimension_semantics<parallel>], iteration_bounds = array<i64: 1>, scalar_prefetch = 0 : i64, scratch_operands = 0 : i64, tpu.core_type = #tpu.core_type<tc>, window_params = [{transform_indices = @transform_0, window_bounds = array<i64: 8, 32>}, {transform_indices = @transform_1, window_bounds = array<i64: 8, 1>}, {transform_indices = @transform_2, window_bounds = array<i64: 8, 128>}]} {
    %c0 = arith.constant 0 : index
    %c0_0 = arith.constant 0 : index
    %0 = vector.load %arg1[%c0, %c0_0] : memref<8x32xf32, #tpu.memory_space<vmem>>, vector<8x32xf32>
    %cst = arith.constant dense<0xFF800000> : vector<8xf32>
    %1 = vector.multi_reduction <maximumf>, %0, %cst [1] : vector<8x32xf32> to vector<8xf32>
    %2 = vector.shape_cast %1 : vector<8xf32> to vector<8x1xf32>
    %3 = vector.broadcast %2 : vector<8x1xf32> to vector<8x32xf32>
    %4 = arith.subf %0, %3 : vector<8x32xf32>
    %5 = math.exp %4 : vector<8x32xf32>
    %cst_1 = arith.constant dense<0.000000e+00> : vector<8xf32>
    %6 = vector.multi_reduction <add>, %5, %cst_1 [1] : vector<8x32xf32> to vector<8xf32>
    %7 = vector.shape_cast %6 : vector<8xf32> to vector<8x1xf32>
    %8 = math.log %7 : vector<8x1xf32>
    %cst_2 = arith.constant dense<0.000000e+00> : vector<8xf32>
    %9 = vector.multi_reduction <add>, %4, %cst_2 [1] : vector<8x32xf32> to vector<8xf32>
    %10 = vector.shape_cast %9 : vector<8xf32> to vector<8x1xf32>
    %c8_i32 = arith.constant 8 : i32
    %11 = arith.muli %arg0, %c8_i32 : i32
    %12 = tpu.iota {dimensions = array<i32: 0>} : vector<8x1xi32>
    %13 = vector.broadcast %11 : i32 to vector<8x1xi32>
    %14 = arith.addi %13, %12 : vector<8x1xi32>
    %c8_i32_3 = arith.constant 8 : i32
    %15 = vector.broadcast %c8_i32_3 : i32 to vector<8x1xi32>
    %16 = arith.cmpi slt, %14, %15 : vector<8x1xi32>
    %cst_4 = arith.constant 3.200000e+01 : f32
    %17 = vector.broadcast %cst_4 : f32 to vector<8x1xf32>
    %18 = arith.mulf %17, %8 : vector<8x1xf32>
    %19 = arith.subf %18, %10 : vector<8x1xf32>
    %cst_5 = arith.constant 0.000000e+00 : f32
    %20 = vector.broadcast %cst_5 : f32 to vector<8x1xf32>
    %21 = arith.select %16, %19, %20 : vector<8x1xi1>, vector<8x1xf32>
    %c0_6 = arith.constant 0 : index
    %c0_7 = arith.constant 0 : index
    %22 = vector.load %arg2[%c0_6, %c0_7] : memref<8x1xi32, #tpu.memory_space<vmem>>, vector<8x1xi32>
    %c-100_i32 = arith.constant -100 : i32
    %23 = vector.broadcast %c-100_i32 : i32 to vector<8x1xi32>
    %24 = arith.cmpi ne, %22, %23 : vector<8x1xi32>
    %25 = arith.andi %24, %16 : vector<8x1xi1>
    %26 = tpu.iota {dimensions = array<i32: 1>} : vector<8x32xi32>
    %27 = vector.broadcast %22 : vector<8x1xi32> to vector<8x32xi32>
    %28 = arith.cmpi eq, %26, %27 : vector<8x32xi32>
    %29 = vector.broadcast %25 : vector<8x1xi1> to vector<8x32xi1>
    %30 = arith.andi %28, %29 : vector<8x32xi1>
    %cst_8 = arith.constant 0.000000e+00 : f32
    %31 = vector.broadcast %cst_8 : f32 to vector<8x32xf32>
    %32 = arith.select %30, %4, %31 : vector<8x32xi1>, vector<8x32xf32>
    %cst_9 = arith.constant dense<0.000000e+00> : vector<8xf32>
    %33 = vector.multi_reduction <add>, %32, %cst_9 [1] : vector<8x32xf32> to vector<8xf32>
    %34 = vector.shape_cast %33 : vector<8xf32> to vector<8x1xf32>
    %cst_10 = arith.constant 0.000000e+00 : f32
    %35 = vector.broadcast %cst_10 : f32 to vector<8x1xf32>
    %36 = arith.select %25, %8, %35 : vector<8x1xi1>, vector<8x1xf32>
    %37 = arith.subf %36, %34 : vector<8x1xf32>
    %38 = vector.shape_cast %21 : vector<8x1xf32> to vector<1x8x1xf32>
    %cst_11 = arith.constant dense<0.000000e+00> : vector<1xf32>
    %39 = vector.multi_reduction <add>, %38, %cst_11 [1, 2] : vector<1x8x1xf32> to vector<1xf32>
    %40 = vector.shape_cast %39 : vector<1xf32> to vector<1x1x1xf32>
    %41 = vector.extract %40[0, 0, 0] : f32 from vector<1x1x1xf32>
    %42 = vector.shape_cast %37 : vector<8x1xf32> to vector<1x8x1xf32>
    %cst_12 = arith.constant dense<0.000000e+00> : vector<1xf32>
    %43 = vector.multi_reduction <add>, %42, %cst_12 [1, 2] : vector<1x8x1xf32> to vector<1xf32>
    %44 = vector.shape_cast %43 : vector<1xf32> to vector<1x1x1xf32>
    %45 = vector.extract %44[0, 0, 0] : f32 from vector<1x1x1xf32>
    %46 = arith.extui %25 : vector<8x1xi1> to vector<8x1xi32>
    %47 = arith.sitofp %46 : vector<8x1xi32> to vector<8x1xf32>
    %48 = vector.shape_cast %47 : vector<8x1xf32> to vector<1x8x1xf32>
    %cst_13 = arith.constant dense<0.000000e+00> : vector<1xf32>
    %49 = vector.multi_reduction <add>, %48, %cst_13 [1, 2] : vector<1x8x1xf32> to vector<1xf32>
    %50 = vector.shape_cast %49 : vector<1xf32> to vector<1x1x1xf32>
    %51 = vector.extract %50[0, 0, 0] : f32 from vector<1x1x1xf32>
    %52 = tpu.iota {dimensions = array<i32: 0>} : vector<8x128xi32>
    %53 = tpu.iota {dimensions = array<i32: 1>} : vector<8x128xi32>
    %c0_i32 = arith.constant 0 : i32
    %54 = vector.broadcast %c0_i32 : i32 to vector<8x128xi32>
    %55 = arith.cmpi eq, %52, %54 : vector<8x128xi32>
    %c0_i32_14 = arith.constant 0 : i32
    %56 = vector.broadcast %c0_i32_14 : i32 to vector<8x128xi32>
    %57 = arith.cmpi eq, %53, %56 : vector<8x128xi32>
    %58 = arith.andi %55, %57 : vector<8x128xi1>
    %cst_15 = arith.constant 0.000000e+00 : f32
    %59 = vector.broadcast %41 : f32 to vector<8x128xf32>
    %60 = vector.broadcast %cst_15 : f32 to vector<8x128xf32>
    %61 = arith.select %58, %59, %60 : vector<8x128xi1>, vector<8x128xf32>
    %c1_i32 = arith.constant 1 : i32
    %62 = vector.broadcast %c1_i32 : i32 to vector<8x128xi32>
    %63 = arith.cmpi eq, %53, %62 : vector<8x128xi32>
    %64 = arith.andi %55, %63 : vector<8x128xi1>
    %cst_16 = arith.constant 0.000000e+00 : f32
    %65 = vector.broadcast %45 : f32 to vector<8x128xf32>
    %66 = vector.broadcast %cst_16 : f32 to vector<8x128xf32>
    %67 = arith.select %64, %65, %66 : vector<8x128xi1>, vector<8x128xf32>
    %68 = arith.addf %61, %67 : vector<8x128xf32>
    %c2_i32 = arith.constant 2 : i32
    %69 = vector.broadcast %c2_i32 : i32 to vector<8x128xi32>
    %70 = arith.cmpi eq, %53, %69 : vector<8x128xi32>
    %71 = arith.andi %55, %70 : vector<8x128xi1>
    %cst_17 = arith.constant 0.000000e+00 : f32
    %72 = vector.broadcast %51 : f32 to vector<8x128xf32>
    %73 = vector.broadcast %cst_17 : f32 to vector<8x128xf32>
    %74 = arith.select %71, %72, %73 : vector<8x128xi1>, vector<8x128xf32>
    %75 = arith.addf %68, %74 : vector<8x128xf32>
    %c0_18 = arith.constant 0 : index
    %c0_19 = arith.constant 0 : index
    %76 = vector.load %arg3[%c0_18, %c0_19] : memref<8x128xf32, #tpu.memory_space<vmem>>, vector<8x128xf32>
    tpu.vector_store %arg3[%c0_18, %c0_19], %75 {strides = array<i32>} : memref<8x128xf32, #tpu.memory_space<vmem>>, vector<8x128xf32>,
    return
  }
  func.func @transform_0(%arg0: i32) -> (i32, i32) {
    %c0_i32 = arith.constant 0 : i32
    %c0_i32_0 = arith.constant 0 : i32
    return %arg0, %c0_i32 : i32, i32
  }
  func.func @transform_1(%arg0: i32) -> (i32, i32) {
    %c0_i32 = arith.constant 0 : i32
    %c0_i32_0 = arith.constant 0 : i32
    return %arg0, %c0_i32 : i32, i32
  }
  func.func @transform_2(%arg0: i32) -> (i32, i32) {
    %c0_i32 = arith.constant 0 : i32
    %c0_i32_0 = arith.constant 0 : i32
    return %arg0, %c0_i32 : i32, i32
  }
}

</mosaic_0001>

<bundles_post_ra>
// kernel: tpu_custom_call.1
= control target key start
LH: loop header
LB: loop body
LE: loop exit
PB: predicated region body
PF: predicated region fallthrough
CT: control target
= control target key end

     0   :  { %vm13_vm0 = vcmask 261120   ;;  %s204_s0 = inlined_call_operand.vmem [shape: f32[8,32], index: 0, kind: input, shape index: {}]   ;;  %s205_s1 = inlined_call_operand.vmem [shape: s32[8,1], index: 1, kind: input, shape index: {}]   ;;  %s206_s2 = inlined_call_operand.hbm [shape: f32[8,128], index: 2, kind: output, shape index: {}]  }
   0x1   :  { %v12_v0 = vld [vmem:[%s204_s0] sm:$0xff] }
   0x2   :  { %v37_v1 = vld [vmem:[%s205_s1] sm:$0xff] }
   0x3   :  { %7 = vsyncpa [#allocation3], 0  ;;  %v14_v2 = vsel %vm13_vm0, %v12_v0, -inf  ;;  %v164_v3 = vmov 0   ;;  %vm38_vm1 = vcmp.ne.s32.totalorder %v37_v1, 4294967196  ;;  %v29_v11 = vlaneseq  ;;  %s166_s13 = smov [#allocation2]  }
   0x4   :  { %133 = vset.pattern.permute.xlu1 %v164_v3  ;;  %132 = vset.pattern.permute.xlu0 %v164_v3  ;;  %v46_v4 = vsel %vm38_vm1, 1, %v164_v3  ;;  %vm58_vm5 = vcmask 7168   ;;  %v165_v28 = vmov 0.0   ;;  %s111_s14 = sshll.u32 %s166_s13, 4  ;;  %s113_s18 = sshll.u32 %s206_s2, 4  ;;  %s112_s14 = int_to_ptr.vmem [resolvable:$true] %s111_s14  ;;  %s114_s18 = int_to_ptr.hbm [resolvable:$true] %s113_s18 }
   0x5   :  { %15 = vmax.xlane.f32.xlu0 %v14_v2  ;;  %48 = vperm.xlu1 %133, %v46_v4   ;;  %v192_v13 = vand.u32 127, %v29_v11  ;;  %v122_v29 = vsel %vm38_vm1, 1.0, %v165_v28  ;;  %v30_v52 = vshrl.u32 %v29_v11, 7 }
   0x6   :  { %v80_v30 = vsel %vm58_vm5, %v122_v29, 0.0 }
   0x7   :  { %vm90_vm6 = vcmp.eq.s32.totalorder %v30_v52, 0  ;;  %vm91_vm7 = vcmp.eq.s32.totalorder %v192_v13, 0  ;;  %vm95_vm8 = vcmp.eq.s32.totalorder %v192_v13, 1  ;;  %vm100_vm11 = vcmp.eq.s32.totalorder %v192_v13, 2 }
   0x8   :  { %vm92_vm9 = vmand %vm90_vm6, %vm91_vm7 }
   0x9   :  { %vm96_vm10 = vmand %vm90_vm6, %vm95_vm8 }
   0xa   :  { %vm101_vm12 = vmand %vm90_vm6, %vm100_vm11 }
  0x19   :  { %43 = vperm.xlu0 %132, %v37_v1  }
  0x77   :  { %v49_v12 = vpop.permute.xlu1 %48 }
  0x78   :  { %v16_v5 = vpop.xlane.xlu0 %15  ;;  %vm50_vm2 = vcmp.eq.s32.totalorder %v49_v12, 1 }
  0x79   :  { %v17_v6 = vsub.f32 %v12_v0, %v16_v5 }
  0x7b   :  { %v18_v7 = vmul.f32 1.442695, %v17_v6  ;;  %v25_v8 = vsel %vm13_vm0, %v17_v6, 0.0 }
  0x7c   :  { %26 = vadd.xlane.f32.xlu2 %v25_v8 }
  0x7d   :  { %134 = vpow2.f32 %v18_v7 }
  0x83   :  { %v135_v9 = vpop.eup %134 }
  0x84   :  { %v20_v10 = vsel %vm13_vm0, %v135_v9, 0.0 }
  0x85   :  { %21 = vadd.xlane.f32.xlu1 %v20_v10 }
  0x8b   :  { %v44_v14 = vpop.permute.xlu0 %43 }
  0x8c   :  { %vm45_vm3 = vcmp.eq.s32.totalorder %v192_v13, %v44_v14 }
  0x8d   :  { %vm51_vm4 = vmand %vm45_vm3, %vm50_vm2 }
  0x8e   :  { %v52_v15 = vsel %vm51_vm4, %v17_v6, 0.0 }
  0x8f   :  { %v53_v16 = vsel %vm13_vm0, %v52_v15, 0.0 }
  0x90   :  { %54 = vadd.xlane.f32.xlu2 %v53_v16 }
  0xef   :  { %v27_v18 = vpop.xlane.xlu2 %26 }
  0xf8   :  { %v22_v17 = vpop.xlane.xlu1 %21 }
  0xf9   :  { %136 = vlog2.f32 %v22_v17 }
  0xff   :  { %v137_v19 = vpop.eup %136 }
 0x100   :  { %v24_v20 = vmul.f32 0.6931472, %v137_v19 }
 0x102   :  { %v56_v21 = vsel %vm38_vm1, %v24_v20, 0.0  ;;  %v34_v24 = vmul.f32 32.0, %v24_v20 }
 0x103   :  { %v55_v22 = vpop.xlane.xlu2 %54 }
 0x104   :  { %v57_v23 = vsub.f32 %v56_v21, %v55_v22  ;;  %v35_v26 = vsub.f32 %v34_v24, %v27_v18 }
 0x106   :  { %v69_v25 = vsel %vm58_vm5, %v57_v23, 0.0  ;;  %v59_v27 = vsel %vm58_vm5, %v35_v26, 0.0 }
 0x107   :  { %70 = vadd.xlane.f32.xlu2 %v69_v25 }
 0x10f   :  { %60 = vadd.xlane.f32.xlu2 %v59_v27 }
 0x117   :  { %81 = vadd.xlane.f32.xlu2 %v80_v30 }
 0x17a   :  { %v71_v31 = vpop.xlane.xlu2 %70 }
 0x17b   :  { %v72_v32 = vrot.slane %v71_v31, 4 }
 0x17d   :  { %v73_v33 = vadd.f32 %v72_v32, %v71_v31 }
 0x17f   :  { %v74_v34 = vrot.slane %v73_v33, 2 }
 0x181   :  { %v75_v38 = vadd.f32 %v74_v34, %v73_v33 }
 0x182   :  { %v61_v35 = vpop.xlane.xlu2 %60 }
 0x183   :  { %v62_v36 = vrot.slane %v61_v35, 4  ;;  %v76_v42 = vrot.slane %v75_v38, 1 }
 0x185   :  { %v63_v37 = vadd.f32 %v62_v36, %v61_v35  ;;  %v77_v47 = vadd.f32 %v76_v42, %v75_v38 }
 0x187   :  { %v64_v39 = vrot.slane %v63_v37, 2 }
 0x189   :  { %v65_v40 = vadd.f32 %v64_v39, %v63_v37 }
 0x18a   :  { %v82_v41 = vpop.xlane.xlu2 %81 }
 0x18b   :  { %v83_v43 = vrot.slane %v82_v41, 4  ;;  %v66_v44 = vrot.slane %v65_v40, 1 }
 0x18d   :  { %v84_v45 = vadd.f32 %v83_v43, %v82_v41  ;;  %v67_v46 = vadd.f32 %v66_v44, %v65_v40 }
 0x18f   :  { %v85_v48 = vrot.slane %v84_v45, 2  ;;  %123 = vpush %v67_v46 }
 0x190   :  { %125 = vpush %v77_v47 }
 0x191   :  { %v86_v49 = vadd.f32 %v85_v48, %v84_v45 }
 0x193   :  { %v87_v50 = vrot.slane %v86_v49, 1 }
 0x195   :  { %v88_v51 = vadd.f32 %v87_v50, %v86_v49 }
 0x197   :  { %127 = vpush %v88_v51 }
 0x1c0   :  { %s124_s0 = spop %123 }
 0x1c1   :  { %s126_s1 = spop %125  ;;  %v93_v53 = vstv %s124_s0 }
 0x1c2   :  { %v97_v54 = vstv %s126_s1  ;;  %v94_v55 = vsel %vm92_vm9, %v93_v53, 0.0 }
 0x1c3   :  { %v98_v56 = vsel %vm96_vm10, %v97_v54, 0.0 }
 0x1c4   :  { %v99_v57 = vadd.f32 %v98_v56, %v94_v55 }
 0x1c8   :  { %s128_s15 = spop %127 }
 0x1c9   :  { %v102_v58 = vstv %s128_s15 }
 0x1ca   :  { %v103_v59 = vsel %vm101_vm12, %v102_v58, 0.0 }
 0x1cb   :  { %v104_v60 = vadd.f32 %v103_v59, %v99_v57 }
 0x1cd   :  { %105 = vst [vmem:[#allocation2] sm:$0xff] %v104_v60 }
 0x1ce   :  { %116 = dma.vmem_to_hbm [thread:$0]  %s112_s14, 128, %s114_s18, [#allocation3]  }
 0x1cf   :  { %162 = dma.done.wait [#allocation3], 128  }
 0x1d0   :  { %163 = vsyncadd [#allocation3], 4294967168 }
 0x1d1   :  { %121 = vsyncpa [#allocation3], 1 }

</bundles_post_ra>
